<compile_context>
chip_gen: v7x
topology: tpu7x:2x2x1
jax: 0.10.0
libtpu: 0.0.40
codegen_flags: <defaults>
</compile_context>

<pallas_src>
import jax
import jax.numpy as jnp
from jax.experimental import pallas as pl
from jax.experimental.pallas import tpu as pltpu


# ----------------------------- kernels -------------------------------------


def qkv_kernel(x_ref, w_ref, b_ref, o_ref):
    # [tq, Cin] @ [Cin, 3C] + [1, 3C]   (f32 accumulate, bf16 store)
    o_ref[...] = (jnp.dot(x_ref[...], w_ref[...],
                          preferred_element_type=jnp.float32)
                  + b_ref[...]).astype(o_ref.dtype)


def attn_kernel(xq_ref, prel_ref, xk_ref, xv_ref,
                wp1_ref, bp1_ref, wp2_ref, bp2_ref,
                bn1s_ref, bn1b_ref, ww1_ref, bw1_ref, w2_ref, b2_ref,
                o_ref):
    ns, tn, _ = prel_ref.shape
    mid = xq_ref.shape[1]
    out_c = xv_ref.shape[2]
    R = ns * tn

    # bf16 slabs -> f32 for the elementwise / softmax chain.
    xq = xq_ref[...].astype(jnp.float32)             # [tn, mid]
    xk = xk_ref[...].astype(jnp.float32)             # [ns, tn, mid]
    xv = xv_ref[...].astype(jnp.float32)             # [ns, tn, out]

    # linear_p (eval-mode BatchNorm folded into the first Linear).
    h = jnp.maximum(
        jnp.dot(prel_ref[...].reshape(R, 3), wp1_ref[...],
                preferred_element_type=jnp.float32) + bp1_ref[...], 0.0)
    pr = (jnp.dot(h, wp2_ref[...], preferred_element_type=jnp.float32)
          + bp2_ref[...]).reshape(ns, tn, out_c)     # [ns, tn, out]

    # w = x_k - x_q + p_r   (out_planes // mid_planes == 1 -> .sum(2) is identity)
    w = xk - xq[None, :, :] + pr                     # [ns, tn, mid]

    # linear_w: BN1 scale/shift + ReLU, Linear (BN2 folded) + ReLU, last Linear
    # with the share-group replication matrix pre-folded in (exact).
    w = jnp.maximum(w * bn1s_ref[...] + bn1b_ref[...], 0.0)
    w = jnp.maximum(
        jnp.dot(w.reshape(R, mid), ww1_ref[...],
                preferred_element_type=jnp.float32) + bw1_ref[...], 0.0)
    logits = (jnp.dot(w, w2_ref[...], preferred_element_type=jnp.float32)
              + b2_ref[...]).reshape(ns, tn, out_c)  # [ns, tn, out]

    # softmax over the neighbour axis (leading axis -> pure VPU reductions).
    m = jnp.max(logits, axis=0, keepdims=True)
    e = jnp.exp(logits - m)
    inv = pl.reciprocal(jnp.sum(e, axis=0, keepdims=True), approx=True)
    wgt = e * inv

    # weighted reduction over neighbours.
    o_ref[...] = jnp.sum((xv + pr) * wgt, axis=0).astype(o_ref.dtype)


# ----------------------------- wrapper --------------------------------------


def knn_indices(p, offsets, nsample):
    """Per-segment kNN (equivalent of pointops.knnquery); plain JAX."""
    N = p.shape[0]
    seg_id = jnp.searchsorted(offsets, jnp.arange(N, dtype=offsets.dtype),
                              side="right")
    d2 = jnp.sum((p[:, None, :] - p[None, :, :]) ** 2, axis=-1)
    d2 = jnp.where(seg_id[:, None] == seg_id[None, :], d2, jnp.float32(1e30))
    _, idx = jax.lax.top_k(-d2, nsample)
    return idx


def point_transformer_layer(p, x, offsets, params, *, nsample=16,
                            share_planes=8, tn=128, tq=512):
    N, cin = x.shape
    mid = params["Wq"].shape[1]
    out_c = params["Wv"].shape[1]
    assert mid == out_c, "mid_planes = out_planes // 1 in the PyTorch module"
    assert tn % 8 == 0 and tq % 8 == 0, "tiles must be multiples of 8 sublanes"
    c_s = out_c // share_planes
    qkv_c = 2 * mid + out_c
    ns = nsample

    # --- neighbour search (pointops.queryandgroup's knnquery), plain JAX -----
    idx = knn_indices(p, offsets, nsample)            # [N, ns]

    # --- kernel 1: fused q/k/v projection (large row tile, bf16 output) ------
    npad_q = int(pl.cdiv(N, tq)) * tq
    x_pad = jnp.pad(x, ((0, npad_q - N), (0, 0)))
    wqkv = jnp.concatenate([params["Wq"], params["Wk"], params["Wv"]], axis=1)
    bqkv = jnp.concatenate([params["bq"], params["bk"], params["bv"]]).reshape(1, qkv_c)
    qkv = pl.pallas_call(
        qkv_kernel,
        out_shape=jax.ShapeDtypeStruct((npad_q, qkv_c), jnp.bfloat16),
        grid_spec=pltpu.PrefetchScalarGridSpec(
            num_scalar_prefetch=0, grid=(npad_q // tq,),
            in_specs=[pl.BlockSpec((tq, cin), lambda i: (i, 0)),
                      pl.BlockSpec((cin, qkv_c), lambda i: (0, 0)),
                      pl.BlockSpec((1, qkv_c), lambda i: (0, 0))],
            out_specs=pl.BlockSpec((tq, qkv_c), lambda i: (i, 0))),
        compiler_params=pltpu.CompilerParams(
            dimension_semantics=("parallel",),
            vmem_limit_bytes=48 << 20),
    )(x_pad, wqkv, bqkv)
    x_q = qkv[:N, :mid]
    x_k = qkv[:N, mid:2 * mid]
    x_v = qkv[:N, 2 * mid:]

    # --- gather neighbours, NEIGHBOUR-MAJOR [ns, N, C] bf16 slabs ------------
    idxT = idx.T                                      # [ns, N]
    prel = p[idxT] - p[None, :, :]                    # [ns, N, 3]   f32
    xkg = x_k[idxT]                                   # [ns, N, mid] bf16
    xvg = x_v[idxT]                                   # [ns, N, out] bf16

    npad = int(pl.cdiv(N, tn)) * tn
    pad_n = npad - N
    prel2 = jnp.pad(prel, ((0, 0), (0, pad_n), (0, 0)))
    xk2 = jnp.pad(xkg, ((0, 0), (0, pad_n), (0, 0)))
    xv2 = jnp.pad(xvg, ((0, 0), (0, pad_n), (0, 0)))
    xq2 = jnp.pad(x_q, ((0, pad_n), (0, 0)))

    # --- fold eval-mode BatchNorms + the share-group replication matrix ------
    wp1f = params["Wp1"] * params["bnp_scale"][None, :]
    bp1f = (params["bp1"] * params["bnp_scale"] + params["bnp_shift"]).reshape(1, 3)
    ww1f = params["Ww1"] * params["bn2_scale"][None, :]
    bw1f = (params["bw1"] * params["bn2_scale"] + params["bn2_shift"]).reshape(1, c_s)
    rep = jnp.tile(jnp.eye(c_s, dtype=jnp.float32), (1, share_planes))  # [c_s, out]
    w2rep = params["Ww2"] @ rep                       # [c_s, out]
    b2rep = (params["bw2"] @ rep).reshape(1, out_c)   # [1, out]

    wspec = lambda r, c: pl.BlockSpec((r, c), lambda i: (0, 0))
    out = pl.pallas_call(
        attn_kernel,
        out_shape=jax.ShapeDtypeStruct((npad, out_c), jnp.float32),
        grid_spec=pltpu.PrefetchScalarGridSpec(
            num_scalar_prefetch=0, grid=(npad // tn,),
            in_specs=[
                pl.BlockSpec((tn, mid), lambda i: (i, 0)),            # x_q
                pl.BlockSpec((ns, tn, 3), lambda i: (0, i, 0)),       # p_rel
                pl.BlockSpec((ns, tn, mid), lambda i: (0, i, 0)),     # x_k (grouped)
                pl.BlockSpec((ns, tn, out_c), lambda i: (0, i, 0)),   # x_v (grouped)
                wspec(3, 3), wspec(1, 3),                 # linear_p.0 (BN folded)
                wspec(3, out_c), wspec(1, out_c),         # linear_p.3
                wspec(1, mid), wspec(1, mid),             # linear_w BN1 scale/shift
                wspec(mid, c_s), wspec(1, c_s),           # linear_w.2 (BN2 folded)
                wspec(c_s, out_c), wspec(1, out_c),       # linear_w.5 (rep folded)
            ],
            out_specs=pl.BlockSpec((tn, out_c), lambda i: (i, 0))),
        compiler_params=pltpu.CompilerParams(
            dimension_semantics=("parallel",),
            vmem_limit_bytes=48 << 20),
    )(xq2, prel2, xk2, xv2,
      wp1f, bp1f, params["Wp2"], params["bp2"].reshape(1, out_c),
      params["bn1_scale"].reshape(1, mid), params["bn1_shift"].reshape(1, mid),
      ww1f, bw1f, w2rep, b2rep)

    return out[:N]


# ----------------------------- reference ------------------------------------


def reference(p, x, offsets, params, *, nsample, share_planes):
    """Plain-JAX transcription of PointTransformerLayer.forward (eval mode)."""
    relu = lambda t: jnp.maximum(t, 0.0)
    idx = knn_indices(p, offsets, nsample)
    xq = x @ params["Wq"] + params["bq"]
    xk = x @ params["Wk"] + params["bk"]
    xv = x @ params["Wv"] + params["bv"]
    prel = p[idx] - p[:, None, :]
    xkg, xvg = xk[idx], xv[idx]
    h = prel @ params["Wp1"] + params["bp1"]
    h = relu(h * params["bnp_scale"] + params["bnp_shift"])
    pr = h @ params["Wp2"] + params["bp2"]
    w = xkg - xq[:, None, :] + pr                       # out // mid == 1
    w = relu(w * params["bn1_scale"] + params["bn1_shift"])
    w = w @ params["Ww1"] + params["bw1"]
    w = relu(w * params["bn2_scale"] + params["bn2_shift"])
    w = w @ params["Ww2"] + params["bw2"]
    w = jax.nn.softmax(w, axis=1)
    n, ns, c = xvg.shape
    s = share_planes
    out = ((xvg + pr).reshape(n, ns, s, c // s) * w[:, :, None, :]).sum(1)
    return out.reshape(n, c)


# ----------------------------- demo ------------------------------------------


def init_params(key, cin, mid, out_c, share_planes):
    c_s = mid // share_planes
    ks = iter(jax.random.split(key, 32))
    nrm = lambda shape: 0.1 * jax.random.normal(next(ks), shape, jnp.float32)

    def bn(c):
        gamma = 1.0 + 0.1 * jax.random.normal(next(ks), (c,), jnp.float32)
        beta = 0.1 * jax.random.normal(next(ks), (c,), jnp.float32)
        mean = 0.1 * jax.random.normal(next(ks), (c,), jnp.float32)
        var = 1.0 + 0.1 * jax.random.uniform(next(ks), (c,), jnp.float32)
        scale = gamma / jnp.sqrt(var + 1e-5)
        return scale, beta - mean * scale

    params = dict(
        Wq=nrm((cin, mid)), bq=nrm((mid,)),
        Wk=nrm((cin, mid)), bk=nrm((mid,)),
        Wv=nrm((cin, out_c)), bv=nrm((out_c,)),
        Wp1=nrm((3, 3)), bp1=nrm((3,)),
        Wp2=nrm((3, out_c)), bp2=nrm((out_c,)),
        Ww1=nrm((mid, c_s)), bw1=nrm((c_s,)),
        Ww2=nrm((c_s, c_s)), bw2=nrm((c_s,)),
    )
    params["bnp_scale"], params["bnp_shift"] = bn(3)
    params["bn1_scale"], params["bn1_shift"] = bn(mid)
    params["bn2_scale"], params["bn2_shift"] = bn(c_s)
    return params


if __name__ == "__main__":
    in_planes, out_planes, share_planes, nsample = 32, 32, 8, 16
    N = 120                                   # deliberately NOT a multiple of tn
    offsets = jnp.array([56, 120], dtype=jnp.int32)   # two batch segments

    key = jax.random.PRNGKey(0)
    kp, kx, kw = jax.random.split(key, 3)
    p = jax.random.normal(kp, (N, 3), jnp.float32)
    x = jax.random.normal(kx, (N, in_planes), jnp.float32)
    params = init_params(kw, in_planes, out_planes, out_planes, share_planes)

    out = point_transformer_layer(p, x, offsets, params, nsample=nsample,
                                  share_planes=share_planes, tn=128, tq=512)
    out = jax.block_until_ready(out)

    ref = reference(p, x, offsets, params, nsample=nsample,
                    share_planes=share_planes)
    assert out.shape == (N, out_planes)
    err = jnp.max(jnp.abs(out - ref))
    # bf16 slab storage + approx reciprocal => slightly loosened tolerance.
    assert jnp.allclose(out, ref, rtol=5e-2, atol=2e-2), f"max err {err}"
    print("KERNEL_OK")
</pallas_src>

<mosaic_0001>
module attributes {stable_mosaic.version = 11 : i64} {
  func.func @qkv_kernel(%arg0: i32, %arg1: memref<512x32xf32, #tpu.memory_space<vmem>>, %arg2: memref<32x96xf32, #tpu.memory_space<vmem>>, %arg3: memref<1x96xf32, #tpu.memory_space<vmem>>, %arg4: memref<512x96xbf16, #tpu.memory_space<vmem>>) attributes {dimension_semantics = [#tpu.dimension_semantics<parallel>], iteration_bounds = array<i64: 1>, scalar_prefetch = 0 : i64, scratch_operands = 0 : i64, tpu.core_type = #tpu.core_type<tc>, window_params = [{transform_indices = @transform_0, window_bounds = array<i64: 512, 32>}, {pipeline_mode = #tpu.pipeline_mode<synchronous>, transform_indices = @transform_1, window_bounds = array<i64: 32, 96>}, {pipeline_mode = #tpu.pipeline_mode<synchronous>, transform_indices = @transform_2, window_bounds = array<i64: 1, 96>}, {transform_indices = @transform_3, window_bounds = array<i64: 512, 96>}]} {
    %c0 = arith.constant 0 : index
    %c0_0 = arith.constant 0 : index
    %0 = vector.load %arg1[%c0, %c0_0] : memref<512x32xf32, #tpu.memory_space<vmem>>, vector<512x32xf32>
    %c0_1 = arith.constant 0 : index
    %c0_2 = arith.constant 0 : index
    %1 = vector.load %arg2[%c0_1, %c0_2] : memref<32x96xf32, #tpu.memory_space<vmem>>, vector<32x96xf32>
    %cst = arith.constant dense<0.000000e+00> : vector<512x96xf32>
    %2 = tpu.matmul %0, %1, %cst {dimension_numbers = #tpu.dot_dimension_numbers<[1], [0], [0], [1], [0, 0, 1, 1], [], []>} : vector<512x32xf32>, vector<32x96xf32>, vector<512x96xf32> -> vector<512x96xf32>
    %c0_3 = arith.constant 0 : index
    %c0_4 = arith.constant 0 : index
    %3 = vector.load %arg3[%c0_3, %c0_4] : memref<1x96xf32, #tpu.memory_space<vmem>>, vector<1x96xf32>
    %4 = vector.broadcast %3 : vector<1x96xf32> to vector<512x96xf32>
    %5 = arith.addf %2, %4 : vector<512x96xf32>
    %6 = arith.truncf %5 : vector<512x96xf32> to vector<512x96xbf16>
    %c0_5 = arith.constant 0 : index
    %c0_6 = arith.constant 0 : index
    %7 = vector.load %arg4[%c0_5, %c0_6] : memref<512x96xbf16, #tpu.memory_space<vmem>>, vector<512x96xbf16>
    tpu.vector_store %arg4[%c0_5, %c0_6], %6 {strides = array<i32>} : memref<512x96xbf16, #tpu.memory_space<vmem>>, vector<512x96xbf16>,
    return
  }
  func.func @transform_0(%arg0: i32) -> (i32, i32) {
    %c0_i32 = arith.constant 0 : i32
    %c0_i32_0 = arith.constant 0 : i32
    return %arg0, %c0_i32 : i32, i32
  }
  func.func @transform_1(%arg0: i32) -> (i32, i32) {
    %c0_i32 = arith.constant 0 : i32
    %c0_i32_0 = arith.constant 0 : i32
    %c0_i32_1 = arith.constant 0 : i32
    return %c0_i32, %c0_i32_0 : i32, i32
  }
  func.func @transform_2(%arg0: i32) -> (i32, i32) {
    %c0_i32 = arith.constant 0 : i32
    %c0_i32_0 = arith.constant 0 : i32
    %c0_i32_1 = arith.constant 0 : i32
    return %c0_i32, %c0_i32_0 : i32, i32
  }
  func.func @transform_3(%arg0: i32) -> (i32, i32) {
    %c0_i32 = arith.constant 0 : i32
    %c0_i32_0 = arith.constant 0 : i32
    return %arg0, %c0_i32 : i32, i32
  }
}

</mosaic_0001>

<bundles_post_ra>
// kernel: tpu_custom_call.1
= control target key start
LH: loop header
LB: loop body
LE: loop exit
PB: predicated region body
PF: predicated region fallthrough
CT: control target
= control target key end

     0   :  { %vm89_vm0 = vcmask 261120   ;;  %vm923_vm1 = vcmask 781312   ;;  %s1982_s1 = inlined_call_operand.vmem [shape: f32[32,96], index: 1, kind: input, shape index: {}]   ;;  %s1983_s0 = inlined_call_operand.vmem [shape: f32[512,32], index: 0, kind: input, shape index: {}]   ;;  %s1984_s2 = inlined_call_operand.vmem [shape: f32[1,96], index: 2, kind: input, shape index: {}]   ;;  %s1985_s3 = inlined_call_operand.vmem [shape: bf16[512,96], index: 3, kind: output, shape index: {}]  }
   0x1   :  { %v78_v0 = vld [vmem:[%s1982_s1] sm:$0xff]  ;;  %v79_v1 = vld [vmem:[%s1982_s1 + $0x8] sm:$0xff]  ;;  %v80_v2 = vld [vmem:[%s1982_s1 + $0x10] sm:$0xff] }
   0x2   :  { %v1357_v3 = vpack.c.bf16 %v79_v1, %v78_v0  ;;  %v81_v4 = vld [vmem:[%s1982_s1 + $0x18] sm:$0xff]  ;;  %v14_v5 = vld [vmem:[%s1983_s0] sm:$0xff]  ;;  %v15_v8 = vld [vmem:[%s1983_s0 + $0x8] sm:$0xff] }
   0x3   :  { %v46_v6 = vld [vmem:[%s1983_s0 + $0x100] sm:$0xff]  ;;  %v1361_v7 = vpack.c.bf16 %v81_v4, %v80_v2  ;;  %1261 = vmatprep.mubr.msk.f32.mxu0 %vm89_vm0, %v14_v5  ;;  %v47_v9 = vld [vmem:[%s1983_s0 + $0x108] sm:$0xff]  ;;  %v16_v10 = vld [vmem:[%s1983_s0 + $0x10] sm:$0xff] }
   0x4   :  { %1309 = vmatprep.mubr.msk.f32.mxu1 %vm89_vm0, %v46_v6  ;;  %1358 = vmatprep.subr.bf16.mxu0 %v1357_v3  ;;  %v48_v11 = vld [vmem:[%s1983_s0 + $0x110] sm:$0xff]  ;;  %v17_v12 = vld [vmem:[%s1983_s0 + $0x18] sm:$0xff]  ;;  %v18_v14 = vld [vmem:[%s1983_s0 + $0x20] sm:$0xff] }
   0x5   :  { %1365 = vmatprep.subr.bf16.mxu1 %v1357_v3  ;;  %1360 = vmatpush3.bf16.msra.mxu0 %v1357_v3  ;;  %v49_v13 = vld [vmem:[%s1983_s0 + $0x118] sm:$0xff]  ;;  %v50_v15 = vld [vmem:[%s1983_s0 + $0x120] sm:$0xff]  ;;  %v19_v16 = vld [vmem:[%s1983_s0 + $0x28] sm:$0xff] }
   0x6   :  { %1367 = vmatpush3.bf16.msra.mxu1 %v1357_v3  ;;  %1362 = vmatprep.subr.bf16.mxu0 %v1361_v7  ;;  %v51_v17 = vld [vmem:[%s1983_s0 + $0x128] sm:$0xff]  ;;  %v20_v18 = vld [vmem:[%s1983_s0 + $0x30] sm:$0xff]  ;;  %v21_v20 = vld [vmem:[%s1983_s0 + $0x38] sm:$0xff] }
   0x7   :  { %1366 = vmatprep.subr.bf16.mxu1 %v1361_v7  ;;  %v52_v19 = vld [vmem:[%s1983_s0 + $0x130] sm:$0xff]  ;;  %v53_v21 = vld [vmem:[%s1983_s0 + $0x138] sm:$0xff]  ;;  %v22_v22 = vld [vmem:[%s1983_s0 + $0x40] sm:$0xff] }
   0x8   :  { %v54_v23 = vld [vmem:[%s1983_s0 + $0x140] sm:$0xff]  ;;  %v23_v24 = vld [vmem:[%s1983_s0 + $0x48] sm:$0xff]  ;;  %v24_v26 = vld [vmem:[%s1983_s0 + $0x50] sm:$0xff] }
   0x9   :  { %1364 = vmatpush3.bf16.msra.mxu0 %v1361_v7  ;;  %v55_v25 = vld [vmem:[%s1983_s0 + $0x148] sm:$0xff]  ;;  %v56_v27 = vld [vmem:[%s1983_s0 + $0x150] sm:$0xff]  ;;  %v25_v28 = vld [vmem:[%s1983_s0 + $0x58] sm:$0xff] }
   0xa   :  { %1368 = vmatpush3.bf16.msra.mxu1 %v1361_v7  ;;  %v57_v29 = vld [vmem:[%s1983_s0 + $0x158] sm:$0xff]  ;;  %v26_v30 = vld [vmem:[%s1983_s0 + $0x60] sm:$0xff]  ;;  %v27_v32 = vld [vmem:[%s1983_s0 + $0x68] sm:$0xff] }
   0xb   :  { %v58_v31 = vld [vmem:[%s1983_s0 + $0x160] sm:$0xff]  ;;  %v59_v33 = vld [vmem:[%s1983_s0 + $0x168] sm:$0xff]  ;;  %v28_v34 = vld [vmem:[%s1983_s0 + $0x70] sm:$0xff] }
   0xc   :  { %1262 = vmatmul.mubr.msk.f32.vlgmr.msra.gmra.mrb[0].mxu0 %vm89_vm0, %v15_v8  ;;  %v60_v35 = vld [vmem:[%s1983_s0 + $0x170] sm:$0xff]  ;;  %v29_v36 = vld [vmem:[%s1983_s0 + $0x78] sm:$0xff]  ;;  %v30_v38 = vld [vmem:[%s1983_s0 + $0x80] sm:$0xff] }
   0xd   :  { %1310 = vmatmul.mubr.msk.f32.vlgmr.msra.gmra.mrb[0].mxu1 %vm89_vm0, %v47_v9  ;;  %1264 = vmatprep.mubr.msk.f32.mxu0 %vm89_vm0, %v16_v10  ;;  %v61_v37 = vld [vmem:[%s1983_s0 + $0x178] sm:$0xff]  ;;  %v62_v39 = vld [vmem:[%s1983_s0 + $0x180] sm:$0xff]  ;;  %v31_v40 = vld [vmem:[%s1983_s0 + $0x88] sm:$0xff] }
   0xe   :  { %1312 = vmatprep.mubr.msk.f32.mxu1 %vm89_vm0, %v48_v11  ;;  %v63_v41 = vld [vmem:[%s1983_s0 + $0x188] sm:$0xff]  ;;  %v32_v42 = vld [vmem:[%s1983_s0 + $0x90] sm:$0xff]  ;;  %v33_v44 = vld [vmem:[%s1983_s0 + $0x98] sm:$0xff] }
   0xf   :  { %v64_v43 = vld [vmem:[%s1983_s0 + $0x190] sm:$0xff]  ;;  %v65_v45 = vld [vmem:[%s1983_s0 + $0x198] sm:$0xff]  ;;  %v34_v46 = vld [vmem:[%s1983_s0 + $0xa0] sm:$0xff] }
  0x10   :  { %1265 = vmatmul.mubr.msk.f32.gmra.mrb[2].mxu0 %vm89_vm0, %v17_v12  ;;  %v66_v47 = vld [vmem:[%s1983_s0 + $0x1a0] sm:$0xff]  ;;  %v35_v48 = vld [vmem:[%s1983_s0 + $0xa8] sm:$0xff]  ;;  %v36_v50 = vld [vmem:[%s1983_s0 + $0xb0] sm:$0xff] }
  0x11   :  { %1313 = vmatmul.mubr.msk.f32.gmra.mrb[2].mxu1 %vm89_vm0, %v49_v13  ;;  %1267 = vmatprep.mubr.msk.f32.mxu0 %vm89_vm0, %v18_v14  ;;  %v67_v49 = vld [vmem:[%s1983_s0 + $0x1a8] sm:$0xff]  ;;  %v68_v51 = vld [vmem:[%s1983_s0 + $0x1b0] sm:$0xff]  ;;  %v37_v52 = vld [vmem:[%s1983_s0 + $0xb8] sm:$0xff] }
  0x12   :  { %1315 = vmatprep.mubr.msk.f32.mxu1 %vm89_vm0, %v50_v15  ;;  %v69_v53 = vld [vmem:[%s1983_s0 + $0x1b8] sm:$0xff]  ;;  %v38_v54 = vld [vmem:[%s1983_s0 + $0xc0] sm:$0xff]  ;;  %v39_v56 = vld [vmem:[%s1983_s0 + $0xc8] sm:$0xff] }
  0x13   :  { %v70_v55 = vld [vmem:[%s1983_s0 + $0x1c0] sm:$0xff]  ;;  %v71_v57 = vld [vmem:[%s1983_s0 + $0x1c8] sm:$0xff]  ;;  %v40_v58 = vld [vmem:[%s1983_s0 + $0xd0] sm:$0xff] }
  0x14   :  { %1268 = vmatmul.mubr.msk.f32.gmra.mrb[4].mxu0 %vm89_vm0, %v19_v16  ;;  %v72_v59 = vld [vmem:[%s1983_s0 + $0x1d0] sm:$0xff]  ;;  %v41_v60 = vld [vmem:[%s1983_s0 + $0xd8] sm:$0xff]  ;;  %v42_v62 = vld [vmem:[%s1983_s0 + $0xe0] sm:$0xff] }
  0x15   :  { %1316 = vmatmul.mubr.msk.f32.gmra.mrb[4].mxu1 %vm89_vm0, %v51_v17  ;;  %1270 = vmatprep.mubr.msk.f32.mxu0 %vm89_vm0, %v20_v18  ;;  %v73_v61 = vld [vmem:[%s1983_s0 + $0x1d8] sm:$0xff]  ;;  %v74_v63 = vld [vmem:[%s1983_s0 + $0x1e0] sm:$0xff]  ;;  %v43_v0 = vld [vmem:[%s1983_s0 + $0xe8] sm:$0xff] }
  0x16   :  { %1318 = vmatprep.mubr.msk.f32.mxu1 %vm89_vm0, %v52_v19  ;;  %v75_v1 = vld [vmem:[%s1983_s0 + $0x1e8] sm:$0xff]  ;;  %v44_v2 = vld [vmem:[%s1983_s0 + $0xf0] sm:$0xff]  ;;  %v45_v4 = vld [vmem:[%s1983_s0 + $0xf8] sm:$0xff] }
  0x17   :  { %v76_v3 = vld [vmem:[%s1983_s0 + $0x1f0] sm:$0xff]  ;;  %v77_v5 = vld [vmem:[%s1983_s0 + $0x1f8] sm:$0xff]  ;;  %v1660_v6 = vld [vmem:[%s1984_s2] ss:$0 sm:$0xff] }
  0x18   :  { %1271 = vmatmul.mubr.msk.f32.gmra.mrb[6].mxu0 %vm89_vm0, %v21_v20 }
  0x19   :  { %1319 = vmatmul.mubr.msk.f32.gmra.mrb[6].mxu1 %vm89_vm0, %v53_v21  ;;  %1273 = vmatprep.mubr.msk.f32.mxu0 %vm89_vm0, %v22_v22 }
  0x1a   :  { %1321 = vmatprep.mubr.msk.f32.mxu1 %vm89_vm0, %v54_v23 }
  0x1c   :  { %1274 = vmatmul.mubr.msk.f32.gmra.mrb[8].mxu0 %vm89_vm0, %v23_v24 }
  0x1d   :  { %1322 = vmatmul.mubr.msk.f32.gmra.mrb[8].mxu1 %vm89_vm0, %v55_v25  ;;  %1276 = vmatprep.mubr.msk.f32.mxu0 %vm89_vm0, %v24_v26 }
  0x1e   :  { %1324 = vmatprep.mubr.msk.f32.mxu1 %vm89_vm0, %v56_v27 }
  0x20   :  { %1277 = vmatmul.mubr.msk.f32.gmra.mrb[10].mxu0 %vm89_vm0, %v25_v28 }
  0x21   :  { %1325 = vmatmul.mubr.msk.f32.gmra.mrb[10].mxu1 %vm89_vm0, %v57_v29  ;;  %1279 = vmatprep.mubr.msk.f32.mxu0 %vm89_vm0, %v26_v30 }
  0x22   :  { %1327 = vmatprep.mubr.msk.f32.mxu1 %vm89_vm0, %v58_v31 }
  0x24   :  { %1280 = vmatmul.mubr.msk.f32.gmra.mrb[12].mxu0 %vm89_vm0, %v27_v32 }
  0x25   :  { %1328 = vmatmul.mubr.msk.f32.gmra.mrb[12].mxu1 %vm89_vm0, %v59_v33  ;;  %1282 = vmatprep.mubr.msk.f32.mxu0 %vm89_vm0, %v28_v34 }
  0x26   :  { %1330 = vmatprep.mubr.msk.f32.mxu1 %vm89_vm0, %v60_v35 }
  0x28   :  { %1283 = vmatmul.mubr.msk.f32.gmra.mrb[14].mxu0 %vm89_vm0, %v29_v36 }
  0x29   :  { %1331 = vmatmul.mubr.msk.f32.gmra.mrb[14].mxu1 %vm89_vm0, %v61_v37  ;;  %1285 = vmatprep.mubr.msk.f32.mxu0 %vm89_vm0, %v30_v38 }
  0x2a   :  { %1333 = vmatprep.mubr.msk.f32.mxu1 %vm89_vm0, %v62_v39 }
  0x2c   :  { %1286 = vmatmul.mubr.msk.f32.gmra.mrb[16].mxu0 %vm89_vm0, %v31_v40 }
  0x2d   :  { %1334 = vmatmul.mubr.msk.f32.gmra.mrb[16].mxu1 %vm89_vm0, %v63_v41  ;;  %1288 = vmatprep.mubr.msk.f32.mxu0 %vm89_vm0, %v32_v42 }
  0x2e   :  { %1336 = vmatprep.mubr.msk.f32.mxu1 %vm89_vm0, %v64_v43 }
  0x30   :  { %1289 = vmatmul.mubr.msk.f32.gmra.mrb[18].mxu0 %vm89_vm0, %v33_v44 }
  0x31   :  { %1337 = vmatmul.mubr.msk.f32.gmra.mrb[18].mxu1 %vm89_vm0, %v65_v45  ;;  %1291 = vmatprep.mubr.msk.f32.mxu0 %vm89_vm0, %v34_v46 }
  0x32   :  { %1339 = vmatprep.mubr.msk.f32.mxu1 %vm89_vm0, %v66_v47 }
  0x34   :  { %1292 = vmatmul.mubr.msk.f32.gmra.mrb[20].mxu0 %vm89_vm0, %v35_v48 }
  0x35   :  { %1340 = vmatmul.mubr.msk.f32.gmra.mrb[20].mxu1 %vm89_vm0, %v67_v49  ;;  %1294 = vmatprep.mubr.msk.f32.mxu0 %vm89_vm0, %v36_v50 }
  0x36   :  { %1342 = vmatprep.mubr.msk.f32.mxu1 %vm89_vm0, %v68_v51 }
  0x38   :  { %1295 = vmatmul.mubr.msk.f32.gmra.mrb[22].mxu0 %vm89_vm0, %v37_v52 }
  0x39   :  { %1343 = vmatmul.mubr.msk.f32.gmra.mrb[22].mxu1 %vm89_vm0, %v69_v53  ;;  %1297 = vmatprep.mubr.msk.f32.mxu0 %vm89_vm0, %v38_v54 }
  0x3a   :  { %1345 = vmatprep.mubr.msk.f32.mxu1 %vm89_vm0, %v70_v55 }
  0x3c   :  { %1298 = vmatmul.mubr.msk.f32.gmra.mrb[24].mxu0 %vm89_vm0, %v39_v56 }
  0x3d   :  { %1346 = vmatmul.mubr.msk.f32.gmra.mrb[24].mxu1 %vm89_vm0, %v71_v57  ;;  %1300 = vmatprep.mubr.msk.f32.mxu0 %vm89_vm0, %v40_v58 }
  0x3e   :  { %1348 = vmatprep.mubr.msk.f32.mxu1 %vm89_vm0, %v72_v59 }
  0x40   :  { %1301 = vmatmul.mubr.msk.f32.gmra.mrb[26].mxu0 %vm89_vm0, %v41_v60 }
  0x41   :  { %1349 = vmatmul.mubr.msk.f32.gmra.mrb[26].mxu1 %vm89_vm0, %v73_v61  ;;  %1303 = vmatprep.mubr.msk.f32.mxu0 %vm89_vm0, %v42_v62 }
  0x42   :  { %1351 = vmatprep.mubr.msk.f32.mxu1 %vm89_vm0, %v74_v63 }
  0x44   :  { %1304 = vmatmul.mubr.msk.f32.gmra.mrb[28].mxu0 %vm89_vm0, %v43_v0 }
  0x45   :  { %1352 = vmatmul.mubr.msk.f32.gmra.mrb[28].mxu1 %vm89_vm0, %v75_v1  ;;  %1306 = vmatprep.mubr.msk.f32.mxu0 %vm89_vm0, %v44_v2 }
  0x46   :  { %1354 = vmatprep.mubr.msk.f32.mxu1 %vm89_vm0, %v76_v3 }
  0x48   :  { %1307 = vmatmul.mubr.msk.f32.gmra.mrb[30].mxu0 %vm89_vm0, %v45_v4 }
  0x49   :  { %1355 = vmatmul.mubr.msk.f32.gmra.mrb[30].mxu1 %vm89_vm0, %v77_v5 }
  0xdf   :  { %v1263_v7 = vpop.f32.mrb[0].mxu0 }
  0xe0   :  { %v1311_v8 = vpop.f32.mrb[0].mxu1  ;;  %v354_v9 = vadd.f32 %v1263_v7, %v1660_v6  ;;  %v348_v11 = vpop.f32.mrb[1].mxu0 }
  0xe1   :  { %v514_v10 = vadd.f32 %v1311_v8, %v1660_v6  ;;  %v508_v12 = vpop.f32.mrb[1].mxu1  ;;  %v349_v13 = vadd.f32 %v1660_v6, %v348_v11 }
  0xe2   :  { %v509_v14 = vadd.f32 %v1660_v6, %v508_v12  ;;  %v1122_v15 = vpack.c.bf16 %v354_v9, %v354_v9 }
  0xe3   :  { %v1154_v16 = vpack.c.bf16 %v514_v10, %v514_v10  ;;  %v1121_v17 = vpack.c.bf16 %v349_v13, %v349_v13  ;;  %v1266_v19 = vpop.f32.mrb[2].mxu0 }
  0xe4   :  { %v1153_v18 = vpack.c.bf16 %v509_v14, %v509_v14  ;;  %v1314_v20 = vpop.f32.mrb[2].mxu1  ;;  %925 = vst.msk [vmem:[%s1985_s3 + $0x4] sm:$0xf] %vm923_vm1, %v1122_v15  ;;  %v364_v21 = vadd.f32 %v1266_v19, %v1660_v6  ;;  %v358_v23 = vpop.f32.mrb[3].mxu0 }
  0xe5   :  { %957 = vst.msk [vmem:[%s1985_s3 + $0x84] sm:$0xf] %vm923_vm1, %v1154_v16  ;;  %v524_v22 = vadd.f32 %v1314_v20, %v1660_v6  ;;  %v518_v24 = vpop.f32.mrb[3].mxu1  ;;  %924 = vst.msk [vmem:[%s1985_s3] sm:$0xf] %vm923_vm1, %v1121_v17  ;;  %v359_v25 = vadd.f32 %v1660_v6, %v358_v23 }
  0xe6   :  { %956 = vst.msk [vmem:[%s1985_s3 + $0x80] sm:$0xf] %vm923_vm1, %v1153_v18  ;;  %v519_v26 = vadd.f32 %v1660_v6, %v518_v24  ;;  %v1124_v27 = vpack.c.bf16 %v364_v21, %v364_v21 }
  0xe7   :  { %v1156_v28 = vpack.c.bf16 %v524_v22, %v524_v22  ;;  %v1123_v29 = vpack.c.bf16 %v359_v25, %v359_v25  ;;  %v1269_v31 = vpop.f32.mrb[4].mxu0 }
  0xe8   :  { %v1155_v30 = vpack.c.bf16 %v519_v26, %v519_v26  ;;  %v1317_v32 = vpop.f32.mrb[4].mxu1  ;;  %927 = vst.msk [vmem:[%s1985_s3 + $0xc] sm:$0xf] %vm923_vm1, %v1124_v27  ;;  %v374_v33 = vadd.f32 %v1269_v31, %v1660_v6  ;;  %v368_v35 = vpop.f32.mrb[5].mxu0 }
  0xe9   :  { %959 = vst.msk [vmem:[%s1985_s3 + $0x8c] sm:$0xf] %vm923_vm1, %v1156_v28  ;;  %v534_v34 = vadd.f32 %v1317_v32, %v1660_v6  ;;  %v528_v36 = vpop.f32.mrb[5].mxu1  ;;  %926 = vst.msk [vmem:[%s1985_s3 + $0x8] sm:$0xf] %vm923_vm1, %v1123_v29  ;;  %v369_v37 = vadd.f32 %v1660_v6, %v368_v35 }
  0xea   :  { %958 = vst.msk [vmem:[%s1985_s3 + $0x88] sm:$0xf] %vm923_vm1, %v1155_v30  ;;  %v529_v38 = vadd.f32 %v1660_v6, %v528_v36  ;;  %v1126_v39 = vpack.c.bf16 %v374_v33, %v374_v33 }
  0xeb   :  { %v1158_v40 = vpack.c.bf16 %v534_v34, %v534_v34  ;;  %v1125_v41 = vpack.c.bf16 %v369_v37, %v369_v37  ;;  %v1272_v43 = vpop.f32.mrb[6].mxu0 }
  0xec   :  { %v1157_v42 = vpack.c.bf16 %v529_v38, %v529_v38  ;;  %v1320_v44 = vpop.f32.mrb[6].mxu1  ;;  %929 = vst.msk [vmem:[%s1985_s3 + $0x14] sm:$0xf] %vm923_vm1, %v1126_v39  ;;  %v384_v45 = vadd.f32 %v1272_v43, %v1660_v6  ;;  %v378_v47 = vpop.f32.mrb[7].mxu0 }
  0xed   :  { %961 = vst.msk [vmem:[%s1985_s3 + $0x94] sm:$0xf] %vm923_vm1, %v1158_v40  ;;  %v544_v46 = vadd.f32 %v1320_v44, %v1660_v6  ;;  %v538_v48 = vpop.f32.mrb[7].mxu1  ;;  %928 = vst.msk [vmem:[%s1985_s3 + $0x10] sm:$0xf] %vm923_vm1, %v1125_v41  ;;  %v379_v49 = vadd.f32 %v1660_v6, %v378_v47 }
  0xee   :  { %960 = vst.msk [vmem:[%s1985_s3 + $0x90] sm:$0xf] %vm923_vm1, %v1157_v42  ;;  %v539_v50 = vadd.f32 %v1660_v6, %v538_v48  ;;  %v1128_v51 = vpack.c.bf16 %v384_v45, %v384_v45 }
  0xef   :  { %v1160_v52 = vpack.c.bf16 %v544_v46, %v544_v46  ;;  %v1127_v53 = vpack.c.bf16 %v379_v49, %v379_v49  ;;  %v1275_v55 = vpop.f32.mrb[8].mxu0 }
  0xf0   :  { %v1159_v54 = vpack.c.bf16 %v539_v50, %v539_v50  ;;  %v1323_v56 = vpop.f32.mrb[8].mxu1  ;;  %931 = vst.msk [vmem:[%s1985_s3 + $0x1c] sm:$0xf] %vm923_vm1, %v1128_v51  ;;  %v394_v57 = vadd.f32 %v1275_v55, %v1660_v6  ;;  %v388_v59 = vpop.f32.mrb[9].mxu0 }
  0xf1   :  { %963 = vst.msk [vmem:[%s1985_s3 + $0x9c] sm:$0xf] %vm923_vm1, %v1160_v52  ;;  %v554_v58 = vadd.f32 %v1323_v56, %v1660_v6  ;;  %v548_v60 = vpop.f32.mrb[9].mxu1  ;;  %930 = vst.msk [vmem:[%s1985_s3 + $0x18] sm:$0xf] %vm923_vm1, %v1127_v53  ;;  %v389_v61 = vadd.f32 %v1660_v6, %v388_v59 }
  0xf2   :  { %962 = vst.msk [vmem:[%s1985_s3 + $0x98] sm:$0xf] %vm923_vm1, %v1159_v54  ;;  %v549_v62 = vadd.f32 %v1660_v6, %v548_v60  ;;  %v1130_v63 = vpack.c.bf16 %v394_v57, %v394_v57 }
  0xf3   :  { %v1162_v0 = vpack.c.bf16 %v554_v58, %v554_v58  ;;  %v1129_v1 = vpack.c.bf16 %v389_v61, %v389_v61  ;;  %v1278_v3 = vpop.f32.mrb[10].mxu0 }
  0xf4   :  { %v1161_v2 = vpack.c.bf16 %v549_v62, %v549_v62  ;;  %v1326_v4 = vpop.f32.mrb[10].mxu1  ;;  %933 = vst.msk [vmem:[%s1985_s3 + $0x24] sm:$0xf] %vm923_vm1, %v1130_v63  ;;  %v404_v5 = vadd.f32 %v1278_v3, %v1660_v6  ;;  %v398_v8 = vpop.f32.mrb[11].mxu0 }
  0xf5   :  { %965 = vst.msk [vmem:[%s1985_s3 + $0xa4] sm:$0xf] %vm923_vm1, %v1162_v0  ;;  %v564_v7 = vadd.f32 %v1326_v4, %v1660_v6  ;;  %v558_v9 = vpop.f32.mrb[11].mxu1  ;;  %932 = vst.msk [vmem:[%s1985_s3 + $0x20] sm:$0xf] %vm923_vm1, %v1129_v1  ;;  %v399_v10 = vadd.f32 %v1660_v6, %v398_v8 }
  0xf6   :  { %964 = vst.msk [vmem:[%s1985_s3 + $0xa0] sm:$0xf] %vm923_vm1, %v1161_v2  ;;  %v559_v11 = vadd.f32 %v1660_v6, %v558_v9  ;;  %v1132_v12 = vpack.c.bf16 %v404_v5, %v404_v5 }
  0xf7   :  { %v1164_v13 = vpack.c.bf16 %v564_v7, %v564_v7  ;;  %v1131_v14 = vpack.c.bf16 %v399_v10, %v399_v10  ;;  %v1281_v16 = vpop.f32.mrb[12].mxu0 }
  0xf8   :  { %v1163_v15 = vpack.c.bf16 %v559_v11, %v559_v11  ;;  %v1329_v17 = vpop.f32.mrb[12].mxu1  ;;  %935 = vst.msk [vmem:[%s1985_s3 + $0x2c] sm:$0xf] %vm923_vm1, %v1132_v12  ;;  %v414_v18 = vadd.f32 %v1281_v16, %v1660_v6  ;;  %v408_v20 = vpop.f32.mrb[13].mxu0 }
  0xf9   :  { %967 = vst.msk [vmem:[%s1985_s3 + $0xac] sm:$0xf] %vm923_vm1, %v1164_v13  ;;  %v574_v19 = vadd.f32 %v1329_v17, %v1660_v6  ;;  %v568_v21 = vpop.f32.mrb[13].mxu1  ;;  %934 = vst.msk [vmem:[%s1985_s3 + $0x28] sm:$0xf] %vm923_vm1, %v1131_v14  ;;  %v409_v22 = vadd.f32 %v1660_v6, %v408_v20 }
  0xfa   :  { %966 = vst.msk [vmem:[%s1985_s3 + $0xa8] sm:$0xf] %vm923_vm1, %v1163_v15  ;;  %v569_v23 = vadd.f32 %v1660_v6, %v568_v21  ;;  %v1134_v24 = vpack.c.bf16 %v414_v18, %v414_v18 }
  0xfb   :  { %v1166_v25 = vpack.c.bf16 %v574_v19, %v574_v19  ;;  %v1133_v26 = vpack.c.bf16 %v409_v22, %v409_v22  ;;  %v1284_v28 = vpop.f32.mrb[14].mxu0 }
  0xfc   :  { %v1165_v27 = vpack.c.bf16 %v569_v23, %v569_v23  ;;  %v1332_v29 = vpop.f32.mrb[14].mxu1  ;;  %937 = vst.msk [vmem:[%s1985_s3 + $0x34] sm:$0xf] %vm923_vm1, %v1134_v24  ;;  %v424_v30 = vadd.f32 %v1284_v28, %v1660_v6  ;;  %v418_v32 = vpop.f32.mrb[15].mxu0 }
  0xfd   :  { %969 = vst.msk [vmem:[%s1985_s3 + $0xb4] sm:$0xf] %vm923_vm1, %v1166_v25  ;;  %v584_v31 = vadd.f32 %v1332_v29, %v1660_v6  ;;  %v578_v33 = vpop.f32.mrb[15].mxu1  ;;  %936 = vst.msk [vmem:[%s1985_s3 + $0x30] sm:$0xf] %vm923_vm1, %v1133_v26  ;;  %v419_v34 = vadd.f32 %v1660_v6, %v418_v32 }
  0xfe   :  { %968 = vst.msk [vmem:[%s1985_s3 + $0xb0] sm:$0xf] %vm923_vm1, %v1165_v27  ;;  %v579_v35 = vadd.f32 %v1660_v6, %v578_v33  ;;  %v1136_v36 = vpack.c.bf16 %v424_v30, %v424_v30 }
  0xff   :  { %v1168_v37 = vpack.c.bf16 %v584_v31, %v584_v31  ;;  %v1135_v38 = vpack.c.bf16 %v419_v34, %v419_v34  ;;  %v1287_v40 = vpop.f32.mrb[16].mxu0 }
 0x100   :  { %v1167_v39 = vpack.c.bf16 %v579_v35, %v579_v35  ;;  %v1335_v41 = vpop.f32.mrb[16].mxu1  ;;  %939 = vst.msk [vmem:[%s1985_s3 + $0x3c] sm:$0xf] %vm923_vm1, %v1136_v36  ;;  %v434_v42 = vadd.f32 %v1287_v40, %v1660_v6  ;;  %v428_v44 = vpop.f32.mrb[17].mxu0 }
 0x101   :  { %971 = vst.msk [vmem:[%s1985_s3 + $0xbc] sm:$0xf] %vm923_vm1, %v1168_v37  ;;  %v594_v43 = vadd.f32 %v1335_v41, %v1660_v6  ;;  %v588_v45 = vpop.f32.mrb[17].mxu1  ;;  %938 = vst.msk [vmem:[%s1985_s3 + $0x38] sm:$0xf] %vm923_vm1, %v1135_v38  ;;  %v429_v46 = vadd.f32 %v1660_v6, %v428_v44 }
 0x102   :  { %970 = vst.msk [vmem:[%s1985_s3 + $0xb8] sm:$0xf] %vm923_vm1, %v1167_v39  ;;  %v589_v47 = vadd.f32 %v1660_v6, %v588_v45  ;;  %v1138_v48 = vpack.c.bf16 %v434_v42, %v434_v42 }
 0x103   :  { %v1170_v49 = vpack.c.bf16 %v594_v43, %v594_v43  ;;  %v1137_v50 = vpack.c.bf16 %v429_v46, %v429_v46  ;;  %v1290_v52 = vpop.f32.mrb[18].mxu0 }
 0x104   :  { %v1169_v51 = vpack.c.bf16 %v589_v47, %v589_v47  ;;  %v1338_v53 = vpop.f32.mrb[18].mxu1  ;;  %941 = vst.msk [vmem:[%s1985_s3 + $0x44] sm:$0xf] %vm923_vm1, %v1138_v48  ;;  %v444_v54 = vadd.f32 %v1290_v52, %v1660_v6  ;;  %v438_v56 = vpop.f32.mrb[19].mxu0 }
 0x105   :  { %973 = vst.msk [vmem:[%s1985_s3 + $0xc4] sm:$0xf] %vm923_vm1, %v1170_v49  ;;  %v604_v55 = vadd.f32 %v1338_v53, %v1660_v6  ;;  %v598_v57 = vpop.f32.mrb[19].mxu1  ;;  %940 = vst.msk [vmem:[%s1985_s3 + $0x40] sm:$0xf] %vm923_vm1, %v1137_v50  ;;  %v439_v58 = vadd.f32 %v1660_v6, %v438_v56 }
 0x106   :  { %972 = vst.msk [vmem:[%s1985_s3 + $0xc0] sm:$0xf] %vm923_vm1, %v1169_v51  ;;  %v599_v59 = vadd.f32 %v1660_v6, %v598_v57  ;;  %v1140_v60 = vpack.c.bf16 %v444_v54, %v444_v54 }
 0x107   :  { %v1172_v61 = vpack.c.bf16 %v604_v55, %v604_v55  ;;  %v1139_v62 = vpack.c.bf16 %v439_v58, %v439_v58  ;;  %v1293_v0 = vpop.f32.mrb[20].mxu0 }
 0x108   :  { %v1171_v63 = vpack.c.bf16 %v599_v59, %v599_v59  ;;  %v1341_v1 = vpop.f32.mrb[20].mxu1  ;;  %943 = vst.msk [vmem:[%s1985_s3 + $0x4c] sm:$0xf] %vm923_vm1, %v1140_v60  ;;  %v454_v2 = vadd.f32 %v1293_v0, %v1660_v6  ;;  %v448_v4 = vpop.f32.mrb[21].mxu0 }
 0x109   :  { %975 = vst.msk [vmem:[%s1985_s3 + $0xcc] sm:$0xf] %vm923_vm1, %v1172_v61  ;;  %v614_v3 = vadd.f32 %v1341_v1, %v1660_v6  ;;  %v608_v5 = vpop.f32.mrb[21].mxu1  ;;  %942 = vst.msk [vmem:[%s1985_s3 + $0x48] sm:$0xf] %vm923_vm1, %v1139_v62  ;;  %v449_v7 = vadd.f32 %v1660_v6, %v448_v4 }
 0x10a   :  { %974 = vst.msk [vmem:[%s1985_s3 + $0xc8] sm:$0xf] %vm923_vm1, %v1171_v63  ;;  %v609_v8 = vadd.f32 %v1660_v6, %v608_v5  ;;  %v1142_v9 = vpack.c.bf16 %v454_v2, %v454_v2 }
 0x10b   :  { %v1174_v10 = vpack.c.bf16 %v614_v3, %v614_v3  ;;  %v1141_v11 = vpack.c.bf16 %v449_v7, %v449_v7  ;;  %v1296_v13 = vpop.f32.mrb[22].mxu0 }
 0x10c   :  { %v1173_v12 = vpack.c.bf16 %v609_v8, %v609_v8  ;;  %v1344_v14 = vpop.f32.mrb[22].mxu1  ;;  %945 = vst.msk [vmem:[%s1985_s3 + $0x54] sm:$0xf] %vm923_vm1, %v1142_v9  ;;  %v464_v15 = vadd.f32 %v1296_v13, %v1660_v6  ;;  %v458_v17 = vpop.f32.mrb[23].mxu0 }
 0x10d   :  { %977 = vst.msk [vmem:[%s1985_s3 + $0xd4] sm:$0xf] %vm923_vm1, %v1174_v10  ;;  %v624_v16 = vadd.f32 %v1344_v14, %v1660_v6  ;;  %v618_v18 = vpop.f32.mrb[23].mxu1  ;;  %944 = vst.msk [vmem:[%s1985_s3 + $0x50] sm:$0xf] %vm923_vm1, %v1141_v11  ;;  %v459_v19 = vadd.f32 %v1660_v6, %v458_v17 }
 0x10e   :  { %976 = vst.msk [vmem:[%s1985_s3 + $0xd0] sm:$0xf] %vm923_vm1, %v1173_v12  ;;  %v619_v20 = vadd.f32 %v1660_v6, %v618_v18  ;;  %v1144_v21 = vpack.c.bf16 %v464_v15, %v464_v15 }
 0x10f   :  { %v1176_v22 = vpack.c.bf16 %v624_v16, %v624_v16  ;;  %v1143_v23 = vpack.c.bf16 %v459_v19, %v459_v19  ;;  %v1299_v25 = vpop.f32.mrb[24].mxu0 }
 0x110   :  { %v1175_v24 = vpack.c.bf16 %v619_v20, %v619_v20  ;;  %v1347_v26 = vpop.f32.mrb[24].mxu1  ;;  %947 = vst.msk [vmem:[%s1985_s3 + $0x5c] sm:$0xf] %vm923_vm1, %v1144_v21  ;;  %v474_v27 = vadd.f32 %v1299_v25, %v1660_v6  ;;  %v468_v29 = vpop.f32.mrb[25].mxu0 }
 0x111   :  { %979 = vst.msk [vmem:[%s1985_s3 + $0xdc] sm:$0xf] %vm923_vm1, %v1176_v22  ;;  %v634_v28 = vadd.f32 %v1347_v26, %v1660_v6  ;;  %v628_v30 = vpop.f32.mrb[25].mxu1  ;;  %946 = vst.msk [vmem:[%s1985_s3 + $0x58] sm:$0xf] %vm923_vm1, %v1143_v23  ;;  %v469_v31 = vadd.f32 %v1660_v6, %v468_v29 }
 0x112   :  { %978 = vst.msk [vmem:[%s1985_s3 + $0xd8] sm:$0xf] %vm923_vm1, %v1175_v24  ;;  %v629_v32 = vadd.f32 %v1660_v6, %v628_v30  ;;  %v1146_v33 = vpack.c.bf16 %v474_v27, %v474_v27 }
 0x113   :  { %v1178_v34 = vpack.c.bf16 %v634_v28, %v634_v28  ;;  %v1145_v35 = vpack.c.bf16 %v469_v31, %v469_v31  ;;  %v1302_v37 = vpop.f32.mrb[26].mxu0 }
 0x114   :  { %v1177_v36 = vpack.c.bf16 %v629_v32, %v629_v32  ;;  %v1350_v38 = vpop.f32.mrb[26].mxu1  ;;  %949 = vst.msk [vmem:[%s1985_s3 + $0x64] sm:$0xf] %vm923_vm1, %v1146_v33  ;;  %v484_v39 = vadd.f32 %v1302_v37, %v1660_v6  ;;  %v478_v41 = vpop.f32.mrb[27].mxu0 }
 0x115   :  { %981 = vst.msk [vmem:[%s1985_s3 + $0xe4] sm:$0xf] %vm923_vm1, %v1178_v34  ;;  %v644_v40 = vadd.f32 %v1350_v38, %v1660_v6  ;;  %v638_v42 = vpop.f32.mrb[27].mxu1  ;;  %948 = vst.msk [vmem:[%s1985_s3 + $0x60] sm:$0xf] %vm923_vm1, %v1145_v35  ;;  %v479_v43 = vadd.f32 %v1660_v6, %v478_v41 }
 0x116   :  { %980 = vst.msk [vmem:[%s1985_s3 + $0xe0] sm:$0xf] %vm923_vm1, %v1177_v36  ;;  %v639_v44 = vadd.f32 %v1660_v6, %v638_v42  ;;  %v1148_v45 = vpack.c.bf16 %v484_v39, %v484_v39 }
 0x117   :  { %v1180_v46 = vpack.c.bf16 %v644_v40, %v644_v40  ;;  %v1147_v47 = vpack.c.bf16 %v479_v43, %v479_v43  ;;  %v1305_v49 = vpop.f32.mrb[28].mxu0 }
 0x118   :  { %v1179_v48 = vpack.c.bf16 %v639_v44, %v639_v44  ;;  %v1353_v50 = vpop.f32.mrb[28].mxu1  ;;  %951 = vst.msk [vmem:[%s1985_s3 + $0x6c] sm:$0xf] %vm923_vm1, %v1148_v45  ;;  %v494_v51 = vadd.f32 %v1305_v49, %v1660_v6  ;;  %v488_v53 = vpop.f32.mrb[29].mxu0 }
 0x119   :  { %983 = vst.msk [vmem:[%s1985_s3 + $0xec] sm:$0xf] %vm923_vm1, %v1180_v46  ;;  %v654_v52 = vadd.f32 %v1353_v50, %v1660_v6  ;;  %v648_v54 = vpop.f32.mrb[29].mxu1  ;;  %950 = vst.msk [vmem:[%s1985_s3 + $0x68] sm:$0xf] %vm923_vm1, %v1147_v47  ;;  %v489_v55 = vadd.f32 %v1660_v6, %v488_v53 }
 0x11a   :  { %982 = vst.msk [vmem:[%s1985_s3 + $0xe8] sm:$0xf] %vm923_vm1, %v1179_v48  ;;  %v649_v56 = vadd.f32 %v1660_v6, %v648_v54  ;;  %v1150_v57 = vpack.c.bf16 %v494_v51, %v494_v51 }
 0x11b   :  { %v1182_v58 = vpack.c.bf16 %v654_v52, %v654_v52  ;;  %v1149_v59 = vpack.c.bf16 %v489_v55, %v489_v55  ;;  %v1308_v61 = vpop.f32.mrb[30].mxu0 }
 0x11c   :  { %v1181_v60 = vpack.c.bf16 %v649_v56, %v649_v56  ;;  %v1356_v62 = vpop.f32.mrb[30].mxu1  ;;  %953 = vst.msk [vmem:[%s1985_s3 + $0x74] sm:$0xf] %vm923_vm1, %v1150_v57  ;;  %v504_v63 = vadd.f32 %v1308_v61, %v1660_v6  ;;  %v498_v1 = vpop.f32.mrb[31].mxu0 }
 0x11d   :  { %985 = vst.msk [vmem:[%s1985_s3 + $0xf4] sm:$0xf] %vm923_vm1, %v1182_v58  ;;  %v664_v0 = vadd.f32 %v1356_v62, %v1660_v6  ;;  %v658_v2 = vpop.f32.mrb[31].mxu1  ;;  %952 = vst.msk [vmem:[%s1985_s3 + $0x70] sm:$0xf] %vm923_vm1, %v1149_v59  ;;  %v499_v3 = vadd.f32 %v1660_v6, %v498_v1 }
 0x11e   :  { %984 = vst.msk [vmem:[%s1985_s3 + $0xf0] sm:$0xf] %vm923_vm1, %v1181_v60  ;;  %v659_v4 = vadd.f32 %v1660_v6, %v658_v2  ;;  %v1152_v5 = vpack.c.bf16 %v504_v63, %v504_v63 }
 0x11f   :  { %v1184_v7 = vpack.c.bf16 %v664_v0, %v664_v0  ;;  %v1151_v8 = vpack.c.bf16 %v499_v3, %v499_v3 }
 0x120   :  { %v1183_v9 = vpack.c.bf16 %v659_v4, %v659_v4  ;;  %955 = vst.msk [vmem:[%s1985_s3 + $0x7c] sm:$0xf] %vm923_vm1, %v1152_v5 }
 0x121   :  { %987 = vst.msk [vmem:[%s1985_s3 + $0xfc] sm:$0xf] %vm923_vm1, %v1184_v7  ;;  %954 = vst.msk [vmem:[%s1985_s3 + $0x78] sm:$0xf] %vm923_vm1, %v1151_v8 }
 0x122   :  { %986 = vst.msk [vmem:[%s1985_s3 + $0xf8] sm:$0xf] %vm923_vm1, %v1183_v9 }

</bundles_post_ra>
